<compile_context>
chip_gen: v7x
topology: tpu7x:2x2x1
jax: 0.10.0
libtpu: 0.0.40
codegen_flags: <defaults>
</compile_context>

<pallas_src>
import functools

import jax
import jax.numpy as jnp
from jax.experimental import pallas as pl
from jax.experimental.pallas import tpu as pltpu

LEAKY_SLOPE = 0.01  # nn.LeakyReLU() default negative_slope


def _round_up(x, m):
    return (x + m - 1) // m * m


def _tpu_generation_params():
    """Best-effort (mxu_rows, vmem_budget_bytes) for the local TPU generation."""
    kind = ""
    try:
        kind = jax.devices()[0].device_kind.lower()
    except Exception:
        pass
    # v6e / v7x have a 2x256^2 MXU; v5e (and older) are 128-wide.
    mxu_rows = 256 if ("v6" in kind or "v7" in kind) else 128
    vmem_capacity = None
    try:
        vmem_capacity = int(pltpu.get_tpu_info().vmem_capacity_bytes)
    except Exception:
        vmem_capacity = None
    if vmem_capacity is None:
        vmem_capacity = 64 * 2**20 if "v7" in kind else 128 * 2**20
    # ~22% headroom for compiler-internal scratch / semaphores:
    # ~100 MiB on 128-MiB parts (v5e/v6e), ~50 MiB on 64-MiB parts (v7x).
    return mxu_rows, int(vmem_capacity * 0.78)


def _fused_conv_kernel(xs_ref, w_ref, o_ref, rhs_ref, *, shifts, k4p, p_pad):
    """One (sample, Cout-tile) grid step.

    xs_ref:  [1, K4p, P_buf]   space-to-depth input slab (compute dtype), resident in VMEM
    w_ref:   [tc, 4*K4p]       fused per-tap weights, K index = tap*K4p + (4c + 2py + px)
    o_ref:   [1, tc, P_pad]    output slab, spatial on lanes (NCHW-flat, lane-dense 128-multiple)
    rhs_ref: [4*K4p, P_pad]    VMEM scratch: K-concatenation of the four lane-shifted taps
    """
    # Pay the lane-unaligned tap slices exactly once, into an aligned scratch (tap-major K).
    for t, shift in enumerate(shifts):       # 4 static taps: (dy, dx) in {0,1}^2
        rhs_ref[t * k4p:(t + 1) * k4p, :] = xs_ref[0, :, shift:shift + p_pad]
    # Single MXU matmul, f32 accumulation; LeakyReLU fused on the f32 result (mul + max).
    acc = jnp.dot(w_ref[...], rhs_ref[...], preferred_element_type=jnp.float32)
    o_ref[0] = jnp.maximum(acc, LEAKY_SLOPE * acc).astype(o_ref.dtype)


@functools.partial(jax.jit, static_argnames=("stride", "padding", "compute_dtype", "out_dtype"))
def downsample_block(x, weight, *, stride=2, padding=1,
                     compute_dtype=jnp.bfloat16, out_dtype=None):
    """Forward of DownSampleBlock (no batchnorm).

    x:      [N, C_in, H, W]     (NCHW, like PyTorch)
    weight: [C_out, C_in, 4, 4]
    returns [N, C_out, OH, OW]  in out_dtype (defaults to x.dtype)
    """
    if stride != 2 or padding != 1:
        raise NotImplementedError("fused kernel implements the k=4, stride=2, padding=1 case")

    N, C, H, W = x.shape
    Cout = weight.shape[0]
    OH = (H + 2 * padding - 4) // stride + 1
    OW = (W + 2 * padding - 4) // stride + 1
    if out_dtype is None:
        out_dtype = x.dtype

    mxu_rows, vmem_budget = _tpu_generation_params()

    # ---- layout constants -------------------------------------------------------------------
    sub = 16 if jnp.dtype(compute_dtype).itemsize == 2 else 8      # sublane packing
    K4 = 4 * C
    K4p = _round_up(K4, sub)

    P_in = (OH + 1) * (OW + 1)           # s2d grid (rows x cols), incl. one halo row/col
    P_out = OH * (OW + 1)                # emitted rows; column OW of each row is garbage (dropped)
    P_pad = _round_up(P_out, 128)        # lane-dense output tile
    shifts = (0, 1, OW + 1, OW + 2)      # flat offsets for (dy,dx) = (0,0),(0,1),(1,0),(1,1)
    P_buf = _round_up(P_pad + shifts[-1], 128)
    # The dx=1 / dy=1 taps wrap across s2d rows; wrapped values land only in output column OW
    # (dropped below) and in the lane-padding region, and every shifted slice stays in-bounds
    # thanks to the zero lane padding.  Keep these invariants if P_out / shifts change.
    assert P_buf >= P_in and P_buf >= P_pad + shifts[-1]

    # ---- Cout tiling (MXU-width tiles on v6e/v7x, 128 on v5e; pad awkward Cout) ---------------
    if Cout <= mxu_rows:
        tc, Cout_pad = Cout, Cout
    else:
        tc = mxu_rows
        Cout_pad = _round_up(Cout, tc)
    n_ct = Cout_pad // tc

    # ---- space-to-depth pre-pass (in compute_dtype: half the HBM traffic of an f32 pass) -----
    ph = 2 * (OH + 1) - H - padding
    pw = 2 * (OW + 1) - W - padding
    xp = jnp.pad(x.astype(compute_dtype), ((0, 0), (0, 0), (padding, ph), (padding, pw)))
    # [N,C,OH+1,2,OW+1,2] -> [N,C,py,px,OH+1,OW+1] -> [N, 4C, (OH+1)*(OW+1)], chan = 4c+2py+px
    xs = xp.reshape(N, C, OH + 1, 2, OW + 1, 2).transpose(0, 1, 3, 5, 2, 4)
    xs = xs.reshape(N, K4, P_in)
    xs = jnp.pad(xs, ((0, 0), (0, K4p - K4), (0, P_buf - P_in)))

    # ---- weight [Cout,C,4,4] -> [Cout_pad, 4*K4p], K = tap*K4p + (4c + 2py + px) -------------
    w2 = weight.reshape(Cout, C, 2, 2, 2, 2).transpose(2, 4, 0, 1, 3, 5)   # (dy,dx,co,c,py,px)
    w2 = w2.reshape(4, Cout, K4)
    w2 = jnp.pad(w2, ((0, 0), (0, Cout_pad - Cout), (0, K4p - K4)))
    w_flat = w2.transpose(1, 0, 2).reshape(Cout_pad, 4 * K4p).astype(compute_dtype)

    # ---- VMEM budget / cost hints -------------------------------------------------------------
    in_item = jnp.dtype(compute_dtype).itemsize
    out_item = jnp.dtype(out_dtype).itemsize
    est = (2 * K4p * P_buf * in_item            # xs slab (double-buffered)
           + 2 * tc * 4 * K4p * in_item         # fused weight tile (double-buffered)
           + 2 * tc * P_pad * out_item          # output block (double-buffered)
           + 4 * K4p * P_pad * in_item          # rhs scratch
           + tc * P_pad * 4)                    # f32 accumulator
    if est > vmem_budget:
        # TODO(synk): tile the spatial lane dim (halo'd window DMA) for very large H*W.
        raise NotImplementedError("per-sample feature map too large for the untiled-spatial kernel")
    vmem_limit = int(min(vmem_budget, max(2 * est, 32 * 2**20)))

    cost = pl.CostEstimate(
        flops=2 * N * Cout_pad * P_pad * 4 * K4p,
        transcendentals=0,
        bytes_accessed=int(xs.size * in_item + w_flat.size * in_item
                           + N * Cout_pad * P_pad * out_item),
    )

    kernel = functools.partial(_fused_conv_kernel, shifts=shifts, k4p=K4p, p_pad=P_pad)

    out_flat = pl.pallas_call(
        kernel,
        out_shape=jax.ShapeDtypeStruct((N, Cout_pad, P_pad), out_dtype),
        grid_spec=pltpu.PrefetchScalarGridSpec(
            num_scalar_prefetch=0,
            grid=(N, n_ct),                       # Cout tiles innermost -> xs slab stays resident
            in_specs=[
                pl.BlockSpec((1, K4p, P_buf), lambda n, j: (n, 0, 0)),   # per-sample s2d slab
                pl.BlockSpec((tc, 4 * K4p), lambda n, j: (j, 0)),        # fused weight tile
            ],
            out_specs=pl.BlockSpec((1, tc, P_pad), lambda n, j: (n, j, 0)),
            scratch_shapes=[pltpu.VMEM((4 * K4p, P_pad), compute_dtype)],
        ),
        compiler_params=pltpu.CompilerParams(
            dimension_semantics=("parallel", "parallel"),
            vmem_limit_bytes=vmem_limit,
        ),
        cost_estimate=cost,
    )(xs, w_flat)

    # Drop the Cout/lane padding and the garbage s2d halo column.  Kernel stores stay lane-dense
    # (128-multiples); this trailing slice is the one remaining (small) XLA pass.
    out = out_flat[:, :Cout, :P_out].reshape(N, Cout, OH, OW + 1)[:, :, :, :OW]
    return out


def _reference(x, weight, stride=2, padding=1):
    """Pure-JAX reference (lax conv) for correctness checking."""
    y = jax.lax.conv_general_dilated(
        x, weight,
        window_strides=(stride, stride),
        padding=[(padding, padding), (padding, padding)],
        dimension_numbers=("NCHW", "OIHW", "NCHW"),
    )
    return jnp.where(y >= 0, y, LEAKY_SLOPE * y)


if __name__ == "__main__":
    key = jax.random.PRNGKey(0)
    kx, kw = jax.random.split(key)

    N, Cin, H, W = 2, 4, 16, 16
    Cout = 8

    x = jax.random.normal(kx, (N, Cin, H, W), dtype=jnp.float32)
    # nn.init.normal_(conv1.weight, mean=0.0, std=0.02)
    weight = 0.02 * jax.random.normal(kw, (Cout, Cin, 4, 4), dtype=jnp.float32)

    ref = _reference(x, weight)

    # Exact-dtype path (f32 operands) -- tight correctness check.
    out_f32 = jax.block_until_ready(downsample_block(x, weight, compute_dtype=jnp.float32))
    assert out_f32.shape == (N, Cout, H // 2, W // 2), out_f32.shape
    assert out_f32.dtype == jnp.float32, out_f32.dtype
    assert jnp.allclose(out_f32, ref, atol=1e-4, rtol=1e-4), float(jnp.max(jnp.abs(out_f32 - ref)))

    # Performance-default path (bf16 operands, f32 accumulation, f32 output) -- loose check.
    out_bf16 = jax.block_until_ready(downsample_block(x, weight))
    assert out_bf16.shape == (N, Cout, H // 2, W // 2), out_bf16.shape
    assert jnp.allclose(out_bf16, ref, atol=2e-2, rtol=2e-2), float(jnp.max(jnp.abs(out_bf16 - ref)))

    # bf16 output path (halves output HBM write traffic) -- loose check.
    out_lo = jax.block_until_ready(downsample_block(x, weight, out_dtype=jnp.bfloat16))
    assert out_lo.dtype == jnp.bfloat16, out_lo.dtype
    assert jnp.allclose(out_lo.astype(jnp.float32), ref, atol=2e-2, rtol=2e-2)

    print("KERNEL_OK")
</pallas_src>

<mosaic_0001>
module attributes {stable_mosaic.version = 11 : i64} {
  func.func @_fused_conv_kernel(%arg0: i32, %arg1: i32, %arg2: memref<1x16x256xf32, #tpu.memory_space<vmem>>, %arg3: memref<8x64xf32, #tpu.memory_space<vmem>>, %arg4: memref<1x8x128xf32, #tpu.memory_space<vmem>>, %arg5: memref<64x128xf32, #tpu.memory_space<vmem>>) attributes {dimension_semantics = [#tpu.dimension_semantics<parallel>, #tpu.dimension_semantics<parallel>], iteration_bounds = array<i64: 2, 1>, scalar_prefetch = 0 : i64, scratch_operands = 1 : i64, tpu.core_type = #tpu.core_type<tc>, window_params = [{transform_indices = @transform_0, window_bounds = array<i64: 1, 16, 256>}, {transform_indices = @transform_1, window_bounds = array<i64: 8, 64>}, {transform_indices = @transform_2, window_bounds = array<i64: 1, 8, 128>}]} {
    %c0 = arith.constant 0 : index
    %c0_0 = arith.constant 0 : index
    %c0_1 = arith.constant 0 : index
    %0 = vector.load %arg2[%c0, %c0_0, %c0_1] : memref<1x16x256xf32, #tpu.memory_space<vmem>>, vector<1x16x128xf32>
    %1 = vector.shape_cast %0 : vector<1x16x128xf32> to vector<16x128xf32>
    %c0_2 = arith.constant 0 : index
    %c0_3 = arith.constant 0 : index
    %2 = vector.load %arg5[%c0_2, %c0_3] : memref<64x128xf32, #tpu.memory_space<vmem>>, vector<16x128xf32>
    tpu.vector_store %arg5[%c0_2, %c0_3], %1 {strides = array<i32>} : memref<64x128xf32, #tpu.memory_space<vmem>>, vector<16x128xf32>,
    %c0_4 = arith.constant 0 : index
    %c0_5 = arith.constant 0 : index
    %c1 = arith.constant 1 : index
    %3 = vector.load %arg2[%c0_4, %c0_5, %c1] : memref<1x16x256xf32, #tpu.memory_space<vmem>>, vector<1x16x128xf32>
    %4 = vector.shape_cast %3 : vector<1x16x128xf32> to vector<16x128xf32>
    %c16 = arith.constant 16 : index
    %c0_6 = arith.constant 0 : index
    %5 = vector.load %arg5[%c16, %c0_6] : memref<64x128xf32, #tpu.memory_space<vmem>>, vector<16x128xf32>
    tpu.vector_store %arg5[%c16, %c0_6], %4 {strides = array<i32>} : memref<64x128xf32, #tpu.memory_space<vmem>>, vector<16x128xf32>,
    %c0_7 = arith.constant 0 : index
    %c0_8 = arith.constant 0 : index
    %c9 = arith.constant 9 : index
    %6 = vector.load %arg2[%c0_7, %c0_8, %c9] : memref<1x16x256xf32, #tpu.memory_space<vmem>>, vector<1x16x128xf32>
    %7 = vector.shape_cast %6 : vector<1x16x128xf32> to vector<16x128xf32>
    %c32 = arith.constant 32 : index
    %c0_9 = arith.constant 0 : index
    %8 = vector.load %arg5[%c32, %c0_9] : memref<64x128xf32, #tpu.memory_space<vmem>>, vector<16x128xf32>
    tpu.vector_store %arg5[%c32, %c0_9], %7 {strides = array<i32>} : memref<64x128xf32, #tpu.memory_space<vmem>>, vector<16x128xf32>,
    %c0_10 = arith.constant 0 : index
    %c0_11 = arith.constant 0 : index
    %c10 = arith.constant 10 : index
    %9 = vector.load %arg2[%c0_10, %c0_11, %c10] : memref<1x16x256xf32, #tpu.memory_space<vmem>>, vector<1x16x128xf32>
    %10 = vector.shape_cast %9 : vector<1x16x128xf32> to vector<16x128xf32>
    %c48 = arith.constant 48 : index
    %c0_12 = arith.constant 0 : index
    %11 = vector.load %arg5[%c48, %c0_12] : memref<64x128xf32, #tpu.memory_space<vmem>>, vector<16x128xf32>
    tpu.vector_store %arg5[%c48, %c0_12], %10 {strides = array<i32>} : memref<64x128xf32, #tpu.memory_space<vmem>>, vector<16x128xf32>,
    %c0_13 = arith.constant 0 : index
    %c0_14 = arith.constant 0 : index
    %12 = vector.load %arg3[%c0_13, %c0_14] : memref<8x64xf32, #tpu.memory_space<vmem>>, vector<8x64xf32>
    %c0_15 = arith.constant 0 : index
    %c0_16 = arith.constant 0 : index
    %13 = vector.load %arg5[%c0_15, %c0_16] : memref<64x128xf32, #tpu.memory_space<vmem>>, vector<64x128xf32>
    %cst = arith.constant dense<0.000000e+00> : vector<8x128xf32>
    %14 = tpu.matmul %12, %13, %cst {dimension_numbers = #tpu.dot_dimension_numbers<[1], [0], [0], [1], [0, 0, 1, 1], [], []>} : vector<8x64xf32>, vector<64x128xf32>, vector<8x128xf32> -> vector<8x128xf32>
    %cst_17 = arith.constant 0.00999999977 : f32
    %15 = vector.broadcast %cst_17 : f32 to vector<8x128xf32>
    %16 = arith.mulf %15, %14 : vector<8x128xf32>
    %17 = arith.maximumf %14, %16 : vector<8x128xf32>
    %c0_18 = arith.constant 0 : index
    %c0_19 = arith.constant 0 : index
    %c0_20 = arith.constant 0 : index
    %18 = vector.load %arg4[%c0_18, %c0_19, %c0_20] : memref<1x8x128xf32, #tpu.memory_space<vmem>>, vector<1x8x128xf32>
    %19 = vector.shape_cast %18 : vector<1x8x128xf32> to vector<8x128xf32>
    %20 = vector.shape_cast %17 : vector<8x128xf32> to vector<1x8x128xf32>
    tpu.vector_store %arg4[%c0_18, %c0_19, %c0_20], %20 {strides = array<i32>} : memref<1x8x128xf32, #tpu.memory_space<vmem>>, vector<1x8x128xf32>,
    return
  }
  func.func @transform_0(%arg0: i32, %arg1: i32) -> (i32, i32, i32) {
    %c0_i32 = arith.constant 0 : i32
    %c0_i32_0 = arith.constant 0 : i32
    %c0_i32_1 = arith.constant 0 : i32
    return %arg0, %c0_i32, %c0_i32_0 : i32, i32, i32
  }
  func.func @transform_1(%arg0: i32, %arg1: i32) -> (i32, i32) {
    %c0_i32 = arith.constant 0 : i32
    %c0_i32_0 = arith.constant 0 : i32
    return %arg1, %c0_i32 : i32, i32
  }
  func.func @transform_2(%arg0: i32, %arg1: i32) -> (i32, i32, i32) {
    %c0_i32 = arith.constant 0 : i32
    %c0_i32_0 = arith.constant 0 : i32
    return %arg0, %arg1, %c0_i32 : i32, i32, i32
  }
}

</mosaic_0001>

<bundles_post_ra>
// kernel: downsample_block.1
= control target key start
LH: loop header
LB: loop body
LE: loop exit
PB: predicated region body
PF: predicated region fallthrough
CT: control target
= control target key end

     0   :  { %s583_s9 = smov 0   ;;  %s585_s10 = smov 0   ;;  %s623_s0 = inlined_call_operand.vmem [shape: f32[2,16,256], index: 0, kind: input, shape index: {}]   ;;  %s624_s1 = inlined_call_operand.vmem [shape: f32[8,64], index: 1, kind: input, shape index: {}]   ;;  %s625_s2 = inlined_call_operand.vmem [shape: f32[2,8,128], index: 2, kind: output, shape index: {}]  }
   0x1   :  { %s587_s11 = smov 0  }
   0x2 LB: > { %s24_s12 = sadd.s32 1, %s556_s10  ;;  %p430_p0 = scmp.ge.s32.totalorder %s560_s11, 1  ;;  %s560_s11 = sphi %s587_s11, %s12_s11   ;;  %s556_s10 = sphi %s585_s10, %s627_s10   ;;  %s552_s9 = sphi %s583_s9, %s626_s9  }
   0x3   : > { %p26_p1 = scmp.ge.s32.totalorder %s24_s12, 2  ;;  %p135_p2 = scmp.lt.s32.totalorder %s560_s11, 3 }
   0x5   : > { %s629_s12 = smov (%p26_p1, %s24_s12), 0  ;;  %p136_p3 = pnand %p430_p0, %p135_p2 }
   0x6   : > { %p163_p4 = scmp.lt.s32.totalorder (!%p136_p3), %s552_s9, 1  ;;  %v562_v0 = vmov (!%p136_p3), 0.0|0.0   ;;  %s563_s17 = smov (!%p136_p3), 119   ;;  %vm565_vm0 = vmmov (!%p136_p3), 0   ;;  %v566_v8 = vmov (!%p136_p3), 0.0   ;;  %vm199_vm1 = vcmask (!%p136_p3), 1039360  }
   0x7   : > { %139 = sbr.rel (%p136_p3) target bundleno = 372 (0x174), region = 28  ;;  %466 = vmatprep.subr.bf16.mxu0 (!%p136_p3), %v562_v0  ;;  %s564_s18 = smov (!%p136_p3), 127   ;;  %463 = vmatprep.mubr.msk.f32.mxu0 (!%p136_p3), %vm565_vm0, %v566_v8  ;;  %vm222_vm2 = vcmask (!%p136_p3), 973824   ;;  %vm245_vm3 = vcmask (!%p136_p3), 965632   ;;  %v252_v36 = vld [vmem:[%s624_s1] sm:$0xff] (!%p136_p3)  ;;  %vm261_vm4 = vcmask (!%p136_p3), 523264  }
   0x8   : > { %s567_s19 = smov (!%p136_p3), 118  }
   0xe   : > { %s631_s9 = smov (!%p163_p4, %s552_s9), 1 }
   0xf   : > { %s437_s13 = sshll.u32 %s631_s9, 5  ;;  %s433_s22 = sshll.u32 %s631_s9, 3 }
  0x10   : > { %s167_s16 = scalar_lea.vmem %s623_s0, %s437_s13  ;;  %s178_s25 = scalar_lea.vmem %s625_s2, %s433_s22 }
  0x11   : > { %v206_v1 = vld [vmem:[%s167_s16] sm:$0xff]  ;;  %v207_v2 = vld [vmem:[%s167_s16 + $0x8] sm:$0xff]  ;;  %v208_v3 = vld [vmem:[%s167_s16 + $0x10] sm:$0xff] }
  0x12   : > { %v518_v4 = vpack.i.bf16 %v207_v2, %v206_v1  ;;  %v209_v5 = vld [vmem:[%s167_s16 + $0x18] sm:$0xff]  ;;  %v467_v6 = vpack.c.bf16 %v208_v3, %v206_v1 }
  0x13   : > { %v523_v7 = vpack.i.bf16 %v209_v5, %v208_v3 }
  0x14   : > { %519 = vrot.lane.b32.xlu1 %v518_v4, %s563_s17  ;;  %509 = vrot.lane.b32.xlu0 %v518_v4, %s564_s18 }
  0x15   : > { %468 = vmatpush3.bf16.msra.mxu0 %v467_v6 }
  0x16   : > { %469 = vmatprep.subr.bf16.mxu0 %v562_v0 }
  0x18   : > { %524 = vrot.lane.b32.xlu1 %v523_v7, %s563_s17  ;;  %514 = vrot.lane.b32.xlu0 %v523_v7, %s564_s18 }
  0x1c   : > { %534 = vrot.lane.b32.xlu1 %v523_v7, %s567_s19  ;;  %529 = vrot.lane.b32.xlu0 %v518_v4, %s567_s19 }
  0x86   : > { %v520_v9 = vpop.permute.xlu1 %519  ;;  %v510_v10 = vpop.permute.xlu0 %509 }
  0x87   : > { %v512_v11 = vunpack.i.h.bf16 %v510_v10  ;;  %v511_v12 = vunpack.i.l.bf16 %v510_v10  ;;  %v522_v13 = vunpack.i.h.bf16 %v520_v9  ;;  %v521_v14 = vunpack.i.l.bf16 %v520_v9 }
  0x89   : > { %v200_v21 = vsel %vm199_vm1, %v511_v12, %v512_v11  ;;  %v223_v26 = vsel %vm222_vm2, %v521_v14, %v522_v13 }
  0x8a   : > { %v525_v15 = vpop.permute.xlu1 %524  ;;  %v515_v16 = vpop.permute.xlu0 %514 }
  0x8b   : > { %v527_v17 = vunpack.i.h.bf16 %v525_v15  ;;  %v526_v18 = vunpack.i.l.bf16 %v525_v15  ;;  %v517_v19 = vunpack.i.h.bf16 %v515_v16  ;;  %v516_v20 = vunpack.i.l.bf16 %v515_v16 }
  0x8d   : > { %v201_v22 = vsel %vm199_vm1, %v516_v20, %v517_v19  ;;  %v224_v27 = vsel %vm222_vm2, %v526_v18, %v527_v17 }
  0x8e   : > { %v470_v23 = vpack.c.bf16 %v201_v22, %v200_v21  ;;  %v535_v24 = vpop.permute.xlu1 %534  ;;  %v530_v25 = vpop.permute.xlu0 %529  ;;  %v473_v34 = vpack.c.bf16 %v224_v27, %v223_v26 }
  0x8f   : > { %v537_v28 = vunpack.i.h.bf16 %v535_v24  ;;  %v536_v29 = vunpack.i.l.bf16 %v535_v24  ;;  %v532_v30 = vunpack.i.h.bf16 %v530_v25  ;;  %v531_v31 = vunpack.i.l.bf16 %v530_v25 }
  0x90   : > { %471 = vmatpush3.bf16.msra.mxu0 %v470_v23 }
  0x91   : > { %472 = vmatprep.subr.bf16.mxu0 %v562_v0  ;;  %v246_v32 = vsel %vm245_vm3, %v531_v31, %v532_v30  ;;  %v247_v33 = vsel %vm245_vm3, %v536_v29, %v537_v28 }
  0x92   : > { %v476_v35 = vpack.c.bf16 %v247_v33, %v246_v32 }
  0x94   : > { %474 = vmatpush3.bf16.msra.mxu0 %v473_v34 }
  0x95   : > { %475 = vmatprep.subr.bf16.mxu0 %v562_v0 }
  0x98   : > { %477 = vmatpush3.bf16.msra.mxu0 %v476_v35 }
  0x9b   : > { %464 = vmatmul.mubr.msk.f32.vlgmr.msra.gmra.mrb[0].mxu0 %vm261_vm4, %v252_v36 }
 0x16e   : > { %v331_v37 = vpop.f32.mrb[0].mxu0 }
 0x16f   : > { %v335_v38 = vmul.f32 0.01, %v331_v37  ;;  %v465_v39 = vpop.f32.mrb[1].mxu0 }
 0x171   : > { %v336_v40 = vmax.f32 %v331_v37, %v335_v38 }
 0x173   : > { %337 = vst [vmem:[%s178_s25] sm:$0xff] %v336_v40 }
 0x174 PF: > { %s12_s11 = sadd.s32 1, %s560_s11   ;;  %s626_s9 = smov %s556_s10 }
 0x175   : > { %p9_p5 = scmp.ge.s32.totalorder %s12_s11, 4   ;;  %s627_s10 = smov %s629_s12 }
 0x177   :  { %11 = sbr.rel (!%p9_p5) target bundleno = 2 (0x2), region = 61 }

</bundles_post_ra>
